<compile_context>
chip_gen: v7x
topology: tpu7x:2x2x1
jax: 0.10.0
libtpu: 0.0.40
codegen_flags: <defaults>
</compile_context>

<pallas_src>
import functools
import math

import jax
import jax.numpy as jnp
from jax.experimental import pallas as pl
from jax.experimental.pallas import tpu as pltpu


# ----------------------------------------------------------------------------
# Kernels
# ----------------------------------------------------------------------------
def _pe_add_flat_kernel(x_ref, pe_ref, out_ref, *, batch, d_model):
    """Flattened layout: x/out blocks are (ts, B*D), pe block is (ts, D).

    The pe tile is added to each 128-aligned lane slice [b*D, (b+1)*D).  Each
    slice is a static Ref view (zero-cost), and for D a multiple of 128 every
    store is a full-width unmasked vreg store — identical ISA to one wide
    (ts, B*D) store, without relying on an in-kernel tile/reshape lowering.
    """
    pe = pe_ref[...]                                    # (ts, D), loaded once
    for b in range(batch):                              # static, tiny loop
        sl = slice(b * d_model, (b + 1) * d_model)
        out_ref[:, sl] = x_ref[:, sl] + pe


def _pe_add_3d_kernel(x_ref, pe_ref, out_ref):
    """Sublane-dense batch (B >= sublane multiple): blocks are (ts, B, D)."""
    out_ref[...] = x_ref[...] + pe_ref[...][:, None, :]   # sublane broadcast


# ----------------------------------------------------------------------------
# pe buffer construction (mirrors the PyTorch __init__; the (max_len, 1, D)
# unsqueeze is replaced by the in-kernel broadcast).
# ----------------------------------------------------------------------------
def make_pe_buffer(d_model, max_len=5000, dtype=jnp.float32):
    position = jnp.arange(max_len, dtype=jnp.float32)[:, None]               # (L, 1)
    div_term = jnp.exp(jnp.arange(0, d_model, 2, dtype=jnp.float32)
                       * (-math.log(10000.0) / d_model))                     # (D/2,)
    pe = jnp.zeros((max_len, d_model), jnp.float32)
    pe = pe.at[:, 0::2].set(jnp.sin(position * div_term))
    pe = pe.at[:, 1::2].set(jnp.cos(position * div_term))
    return pe.astype(dtype)                                                  # (L, D)


# ----------------------------------------------------------------------------
# Sizing helpers
# ----------------------------------------------------------------------------
def _round_up(x, m):
    return ((x + m - 1) // m) * m


def _sublane_multiple(dtype):
    # f32 -> 8, bf16 -> 16, int8/fp8 -> 32 rows per native sublane tile.
    return max(8, 32 // jnp.dtype(dtype).itemsize)


def _vmem_capacity_bytes():
    try:
        cap = getattr(pltpu.get_tpu_info(), "vmem_capacity_bytes", None)
        if cap:
            return int(cap)
    except Exception:
        pass
    return 64 * 1024 * 1024          # conservative: v7x per-TC VMEM


def _choose_seq_rows(S, padded_row_bytes, dtype, target_block_bytes):
    """Row count per block: multiple of the sublane tile, sized so the x block
    is a few MiB (amortizes the ~0.35 us grid-step overhead against HBM BW),
    never exceeding the (padding-aware) target, never exceeding S."""
    sub = _sublane_multiple(dtype)
    rows = (target_block_bytes // max(padded_row_bytes, 1)) // sub * sub
    rows = max(rows, sub)
    rows = min(rows, _round_up(S, sub))
    # Long sequence that still fits in one block: split so the "parallel" grid
    # axis has >=2 blocks (lets v7x shard across its two TensorCores).
    if pl.cdiv(S, rows) <= 1 and S >= 1024:
        rows = _round_up(pl.cdiv(S, 2), sub)
    return rows


# ----------------------------------------------------------------------------
# Forward wrapper
# ----------------------------------------------------------------------------
def positional_encoding_forward(x, pe, *, seq_block=None, donate_x=False):
    """x: (S, B, D) seq-first activations; pe: (max_len, D) sin/cos buffer."""
    S, B, D = x.shape
    dtype = x.dtype
    itemsize = jnp.dtype(dtype).itemsize

    # Match dtypes so the kernel is a pure same-width streaming add.
    if pe.dtype != dtype:
        pe = pe.astype(dtype)

    sub = _sublane_multiple(dtype)
    padded_D = _round_up(D, 128)

    # VMEM-capacity-aware sizing: working set ~= 2*(x_blk + out_blk) + 2*pe_blk
    # ~= 4.1 * x_blk, so keep the x block around budget/5 (capped at 8 MiB —
    # well past the measured roofline plateau).
    vmem_cap = _vmem_capacity_bytes()
    vmem_limit = min(vmem_cap * 3 // 4, 100 * 1024 * 1024)
    target_block = min(8 * 1024 * 1024, (vmem_cap * 2 // 5) // 5)

    # Flatten (S, B, D) -> (S, B*D) when the batch would otherwise pad sublanes
    # and the flattened row stays lane-dense.
    flatten = (B < sub) and ((B * D) % 128 == 0)

    if flatten:
        bd = B * D
        row_bytes = bd * itemsize                                  # lane-dense
        ts = seq_block if seq_block is not None else _choose_seq_rows(
            S, row_bytes, dtype, target_block)
        x_in = x.reshape(S, bd)                                    # free reshape
        kernel = functools.partial(_pe_add_flat_kernel, batch=B, d_model=D)
        in_specs = [pl.BlockSpec((ts, bd), lambda i: (i, 0)),      # x tile
                    pl.BlockSpec((ts, D), lambda i: (i, 0))]       # pe tile
        out_spec = pl.BlockSpec((ts, bd), lambda i: (i, 0))
        out_shape = jax.ShapeDtypeStruct((S, bd), dtype)
    else:
        padded_B = _round_up(B, sub)
        row_bytes = padded_B * padded_D * itemsize                 # padding-aware
        ts = seq_block if seq_block is not None else _choose_seq_rows(
            S, row_bytes, dtype, target_block)
        x_in = x
        kernel = _pe_add_3d_kernel
        in_specs = [pl.BlockSpec((ts, B, D), lambda i: (i, 0, 0)),
                    pl.BlockSpec((ts, D), lambda i: (i, 0))]
        out_spec = pl.BlockSpec((ts, B, D), lambda i: (i, 0, 0))
        out_shape = jax.ShapeDtypeStruct((S, B, D), dtype)

    grid = (pl.cdiv(S, ts),)           # trailing partial block handled by Pallas

    cost = pl.CostEstimate(
        flops=S * B * D,
        transcendentals=0,
        bytes_accessed=itemsize * (2 * S * B * D + S * D),
    )

    out = pl.pallas_call(
        kernel,
        out_shape=out_shape,
        grid_spec=pltpu.PrefetchScalarGridSpec(
            num_scalar_prefetch=0,
            grid=grid,
            in_specs=in_specs,
            out_specs=out_spec,
        ),
        compiler_params=pltpu.CompilerParams(
            dimension_semantics=("parallel",),      # independent seq blocks
            vmem_limit_bytes=vmem_limit,
        ),
        cost_estimate=cost,
        input_output_aliases=({0: 0} if donate_x else {}),
    )(x_in, pe)

    return out.reshape(S, B, D) if flatten else out


# ----------------------------------------------------------------------------
if __name__ == "__main__":
    D_MODEL = 128         # lane-dense last dim
    MAX_LEN = 5000        # PyTorch default

    key = jax.random.PRNGKey(0)
    pe_f32 = make_pe_buffer(D_MODEL, MAX_LEN)

    fwd = jax.jit(positional_encoding_forward,
                  static_argnames=("seq_block", "donate_x"))

    def reference(x, pe):
        S = x.shape[0]
        return x + pe[:S].astype(x.dtype)[:, None, :]

    # 1) Small batch -> flattened (S, B*D) layout, multi-block grid, donated x.
    x1 = jax.random.normal(key, (256, 2, D_MODEL), jnp.float32)
    o1 = jax.block_until_ready(fwd(x1, pe_f32, seq_block=64, donate_x=True))
    assert o1.shape == x1.shape and o1.dtype == x1.dtype
    assert jnp.allclose(o1, reference(x1, pe_f32), atol=1e-6, rtol=1e-6), \
        float(jnp.max(jnp.abs(o1 - reference(x1, pe_f32))))

    # 2) Ragged sequence length: trailing partial block (grid = cdiv(200, 64)).
    x2 = jax.random.normal(jax.random.fold_in(key, 1), (200, 2, D_MODEL),
                           jnp.float32)
    o2 = jax.block_until_ready(fwd(x2, pe_f32, seq_block=64))
    assert jnp.allclose(o2, reference(x2, pe_f32), atol=1e-6, rtol=1e-6)

    # 3) bf16 activations: pe cast to x.dtype inside the wrapper.
    x3 = jax.random.normal(jax.random.fold_in(key, 2), (128, 2, D_MODEL),
                           jnp.bfloat16)
    o3 = jax.block_until_ready(fwd(x3, pe_f32))
    assert o3.dtype == jnp.bfloat16
    assert jnp.allclose(o3.astype(jnp.float32),
                        reference(x3, pe_f32).astype(jnp.float32),
                        atol=2e-2, rtol=2e-2)

    # 4) Sublane-dense batch (B = 8) -> 3-D (non-flattened) path.
    x4 = jax.random.normal(jax.random.fold_in(key, 3), (64, 8, D_MODEL),
                           jnp.float32)
    o4 = jax.block_until_ready(fwd(x4, pe_f32))
    assert jnp.allclose(o4, reference(x4, pe_f32), atol=1e-6, rtol=1e-6)

    print("KERNEL_OK")
</pallas_src>

<mosaic_0001>
module attributes {stable_mosaic.version = 11 : i64} {
  func.func @_pe_add_flat_kernel(%arg0: i32, %arg1: memref<64x256xf32, #tpu.memory_space<vmem>>, %arg2: memref<64x128xf32, #tpu.memory_space<vmem>>, %arg3: memref<64x256xf32, #tpu.memory_space<vmem>>) attributes {dimension_semantics = [#tpu.dimension_semantics<parallel>], iteration_bounds = array<i64: 4>, scalar_prefetch = 0 : i64, scratch_operands = 0 : i64, tpu.core_type = #tpu.core_type<tc>, window_params = [{transform_indices = @transform_0, window_bounds = array<i64: 64, 256>}, {transform_indices = @transform_1, window_bounds = array<i64: 64, 128>}, {transform_indices = @transform_2, window_bounds = array<i64: 64, 256>}]} {
    %c0 = arith.constant 0 : index
    %c0_0 = arith.constant 0 : index
    %0 = vector.load %arg2[%c0, %c0_0] : memref<64x128xf32, #tpu.memory_space<vmem>>, vector<64x128xf32>
    %c0_1 = arith.constant 0 : index
    %c0_2 = arith.constant 0 : index
    %1 = vector.load %arg1[%c0_1, %c0_2] : memref<64x256xf32, #tpu.memory_space<vmem>>, vector<64x128xf32>
    %2 = arith.addf %1, %0 : vector<64x128xf32>
    %c0_3 = arith.constant 0 : index
    %c0_4 = arith.constant 0 : index
    %3 = vector.load %arg3[%c0_3, %c0_4] : memref<64x256xf32, #tpu.memory_space<vmem>>, vector<64x128xf32>
    tpu.vector_store %arg3[%c0_3, %c0_4], %2 {strides = array<i32>} : memref<64x256xf32, #tpu.memory_space<vmem>>, vector<64x128xf32>,
    %c0_5 = arith.constant 0 : index
    %c128 = arith.constant 128 : index
    %4 = vector.load %arg1[%c0_5, %c128] : memref<64x256xf32, #tpu.memory_space<vmem>>, vector<64x128xf32>
    %5 = arith.addf %4, %0 : vector<64x128xf32>
    %c0_6 = arith.constant 0 : index
    %c128_7 = arith.constant 128 : index
    %6 = vector.load %arg3[%c0_6, %c128_7] : memref<64x256xf32, #tpu.memory_space<vmem>>, vector<64x128xf32>
    tpu.vector_store %arg3[%c0_6, %c128_7], %5 {strides = array<i32>} : memref<64x256xf32, #tpu.memory_space<vmem>>, vector<64x128xf32>,
    return
  }
  func.func @transform_0(%arg0: i32) -> (i32, i32) {
    %c0_i32 = arith.constant 0 : i32
    %c0_i32_0 = arith.constant 0 : i32
    return %arg0, %c0_i32 : i32, i32
  }
  func.func @transform_1(%arg0: i32) -> (i32, i32) {
    %c0_i32 = arith.constant 0 : i32
    %c0_i32_0 = arith.constant 0 : i32
    return %arg0, %c0_i32 : i32, i32
  }
  func.func @transform_2(%arg0: i32) -> (i32, i32) {
    %c0_i32 = arith.constant 0 : i32
    %c0_i32_0 = arith.constant 0 : i32
    return %arg0, %c0_i32 : i32, i32
  }
}

</mosaic_0001>

<bundles_post_ra>
// kernel: positional_encoding_forward.1
= control target key start
LH: loop header
LB: loop body
LE: loop exit
PB: predicated region body
PF: predicated region fallthrough
CT: control target
= control target key end

     0   :  { %7 = vsyncpa [#allocation3], 0  ;;  %s636_s0 = inlined_call_operand.vmem [shape: f32[256,256], index: 0, kind: input, shape index: {}, may-alias: {0,2}]   ;;  %s637_s1 = inlined_call_operand.hbm [shape: f32[5000,128], index: 1, kind: input, shape index: {}]   ;;  %s638_s2 = inlined_call_operand.vmem [shape: f32[256,256], index: 2, kind: output, shape index: {}, may-alias: {0,2}]  }
   0x1   :  { %9 = vsyncpa [#allocation3 + $0x1], 0  ;;  %s481_s9 = smov 0   ;;  %s483_s10 = smov 0  }
   0x2   :  { %s485_s11 = smov 0   ;;  %s487_s12 = smov 0  }
   0x3 LB: > { %s340_s13 = sadd.s32 4294967295, %s461_s12   ;;  %s501_s14 = sadd.s32 1, %s461_s12   ;;  %s461_s12 = sphi %s487_s12, %s643_s12   ;;  %s457_s11 = sphi %s485_s11, %s642_s11   ;;  %s453_s10 = sphi %s483_s10, %s641_s10   ;;  %s449_s9 = sphi %s481_s9, %s640_s9  }
   0x4   : > { %s45_s15 = ssub.s32 %s461_s12, %s501_s14  ;;  %s48_s16 = sadd.s32 1, %s457_s11 }
   0x5   : > { %p46_p0 = scmp.eq.s32.totalorder %s45_s15, 0  ;;  %p55_p1 = scmp.ne.s32.totalorder %s457_s11, %s453_s10 }
   0x6   : > { %p56_p2 = scmp.eq.s32.totalorder %s461_s12, 0  ;;  %p61_p3 = scmp.ne.s32.totalorder %s453_s10, %s449_s9 }
   0x7   : > { %s511_s17 = scalar_select %p46_p0, %s457_s11, %s48_s16  }
   0x8   : > { %p57_p4 = por %p56_p2, %p55_p1  ;;  %p62_p5 = scmp.eq.s32.totalorder %s340_s13, 0 }
   0x9   : > { %p343_p7 = scmp.ge.s32.totalorder %s461_s12, 4 }
   0xa   : > { %p515_p6 = por %p62_p5, %p61_p3 }
   0xb   : > { %107 = sbr.rel (%p343_p7) target bundleno = 53 (0x35), region = 16 }
  0x12   : > { %120 = sbr.rel (!%p57_p4) target bundleno = 53 (0x35), region = 24  ;;  %s121_s19 = sand.u32 (%p57_p4), 1, %s457_s11  }
  0x13   : > { %s345_s20 = sshll.u32 (%p57_p4), %s461_s12, 3  ;;  %s344_s21 = sshll.u32 (%p57_p4), %s121_s19, 6 }
  0x14   : > { %s127_s22 = ssub.s32 (%p57_p4), 625, %s345_s20  ;;  %s525_s25 = scalar_lea.sflag (%p57_p4), [#allocation3], %s121_s19 }
  0x15   : > { %p128_p8 = scmp.lt.s32.totalorder (%p57_p4), %s127_s22, 8  ;;  %s125_s26 = scalar_lea.vmem (%p57_p4), [#allocation2], %s344_s21 }
  0x19   : > { %s645_s22 = smov (!%p128_p8, %s127_s22), 8 }
  0x1a   : > { %s522_s23 = sshll.u32 %s645_s22, 7 }
  0x1b   : > { %s132_s24 = ssub.s32 1024, %s522_s23 }
  0x1c   : > { %133 = vsyncadd %s525_s25, %s132_s24  ;;  %p347_p9 = scmp.ne.s32.totalorder %s522_s23, 0  ;;  %s361_s27 = sshll.u32 %s461_s12, 10 }
  0x1d   : > { %s533_s30 = scalar_lea.hbm %s637_s1, %s361_s27  ;;  %s138_s3 = sshll.u32 %s125_s26, 4  ;;  %s535_s3 = int_to_ptr.vmem [resolvable:$true] %s138_s3 }
  0x1e   : > { %s399_s4 = scalar_lea.hbm %s533_s30, %s522_s23  ;;  %s403_s7 = scalar_lea.hbm %s637_s1, 80000 }
  0x1f   : > { %p400_p10 = scmp.ne.s32.totalorder %s533_s30, %s399_s4  ;;  %p404_p13 = scmp.lt.u32.totalorder %s533_s30, %s637_s1 }
  0x20   : > { %p405_p0 = scmp.lt.u32.totalorder %s403_s7, %s399_s4  ;;  %p407_p2 = scmp.lt.u32.totalorder %s399_s4, %s533_s30 }
  0x21   : > { %p401_p11 = pnand %p400_p10, %p347_p9 }
  0x22   : > { %p406_p1 = por %p405_p0, %p404_p13 }
  0x23   : > { %p402_p12 = pneg %p401_p11 }
  0x24   : > { %p408_p3 = por %p407_p2, %p406_p1 }
  0x26   : > { %p409_p4 = pnand %p408_p3, %p402_p12 }
  0x28   : > { %412 = shalt.err (!%p409_p4)
}
  0x29   : > { %s413_s15 = scalar_lea.vmem %s535_s3, %s522_s23  ;;  %s463_s16 = smov [#allocation2]  }
  0x2a   : > { %p414_p5 = scmp.ne.s32.totalorder %s535_s3, %s413_s15  ;;  %s417_s19 = sshll.u32 %s463_s16, 4  ;;  %s418_s19 = int_to_ptr.vmem [resolvable:$false] %s417_s19 }
  0x2b   : > { %s419_s20 = scalar_lea.vmem %s418_s19, 2048  ;;  %p420_p10 = scmp.lt.s32.totalorder %s535_s3, %s418_s19 }
  0x2c   : > { %p415_p7 = pnand %p414_p5, %p347_p9  ;;  %p421_p11 = scmp.lt.s32.totalorder %s419_s20, %s413_s15 }
  0x2e   : > { %p416_p8 = pneg %p415_p7  ;;  %p422_p13 = por %p421_p11, %p420_p10 }
  0x30   : > { %p423_p0 = pnand %p422_p13, %p416_p8 }
  0x32   : > { %426 = shalt.err (!%p423_p0)
}
  0x33   : > { %s464_s21 = smov 128   ;;  %s465_s22 = smov 8  }
  0x34   : > { %144 = dma.hbm_to_vmem [thread:$0]  (%p347_p9), %s533_s30, %s522_s23, %s535_s3, %s525_s25, %s464_s21, %s464_s21, %s465_s22  }
  0x35 PF: > { %p351_p12 = scmp.ge.s32.totalorder %s461_s12, 1  ;;  %p146_p1 = scmp.lt.s32.totalorder %s461_s12, 5 }
  0x37   : > { %p147_p2 = pnand %p351_p12, %p146_p1 }
  0x38   : > { %s152_s24 = sand.u32 (!%p147_p2), 1, %s453_s10  }
  0x39   : > { %150 = sbr.rel (%p147_p2) target bundleno = 93 (0x5d), region = 28  ;;  %s352_s26 = sshll.u32 (!%p147_p2), %s152_s24, 6 }
  0x3a   : > { %s153_s27 = scalar_lea.sflag (!%p147_p2), [#allocation3], %s152_s24  ;;  %s565_s28 = scalar_lea.vmem (!%p147_p2), [#allocation2], %s352_s26 }
  0x40   : > { %444 = dma.done.wait (%p515_p6), %s153_s27, 1024  }
  0x41   : > { %446 = vsyncadd (%p515_p6), %s153_s27, 4294966272  ;;  %s353_s23 = sshll.u32 %s340_s13, 3  ;;  %v203_v0 = vld [vmem:[%s565_s28] sm:$0xff]  ;;  %v204_v10 = vld [vmem:[%s565_s28 + $0x8] sm:$0xff] }
  0x42   : > { %p185_p9 = scmp.lt.s32.totalorder %s353_s23, 31  ;;  %v205_v11 = vld [vmem:[%s565_s28 + $0x10] sm:$0xff]  ;;  %v206_v12 = vld [vmem:[%s565_s28 + $0x18] sm:$0xff]  ;;  %v207_v16 = vld [vmem:[%s565_s28 + $0x20] sm:$0xff] }
  0x43   : > { %v208_v17 = vld [vmem:[%s565_s28 + $0x28] sm:$0xff]  ;;  %v209_v18 = vld [vmem:[%s565_s28 + $0x30] sm:$0xff]  ;;  %v210_v22 = vld [vmem:[%s565_s28 + $0x38] sm:$0xff] }
  0x44   : > { %s647_s23 = smov (!%p185_p9, %s353_s23), 31 }
  0x45   : > { %s362_s25 = sshll.u32 %s647_s23, 4 }
  0x46   : > { %s576_s3 = scalar_lea.vmem %s636_s0, %s362_s25  ;;  %s581_s12 = scalar_lea.vmem %s638_s2, %s362_s25 }
  0x47   : > { %v211_v1 = vld [vmem:[%s576_s3] sm:$0xff]  ;;  %v212_v2 = vld [vmem:[%s576_s3 + $0x10] sm:$0xff] }
  0x48   : > { %v213_v3 = vld [vmem:[%s576_s3 + $0x20] sm:$0xff]  ;;  %v214_v4 = vld [vmem:[%s576_s3 + $0x30] sm:$0xff]  ;;  %v219_v6 = vadd.f32 %v211_v1, %v203_v0  ;;  %v220_v13 = vadd.f32 %v212_v2, %v204_v10 }
  0x49   : > { %v215_v5 = vld [vmem:[%s576_s3 + $0x40] sm:$0xff]  ;;  %v216_v7 = vld [vmem:[%s576_s3 + $0x50] sm:$0xff]  ;;  %v221_v14 = vadd.f32 %v213_v3, %v205_v11  ;;  %v222_v15 = vadd.f32 %v214_v4, %v206_v12 }
  0x4a   : > { %v217_v8 = vld [vmem:[%s576_s3 + $0x60] sm:$0xff]  ;;  %v218_v9 = vld [vmem:[%s576_s3 + $0x70] sm:$0xff]  ;;  %v223_v19 = vadd.f32 %v215_v5, %v207_v16  ;;  %v224_v20 = vadd.f32 %v216_v7, %v208_v17 }
  0x4b   : > { %227 = vst [vmem:[%s581_s12] sm:$0xff] %v219_v6  ;;  %v225_v21 = vadd.f32 %v217_v8, %v209_v18  ;;  %228 = vst [vmem:[%s581_s12 + $0x10] sm:$0xff] %v220_v13  ;;  %v226_v23 = vadd.f32 %v218_v9, %v210_v22 }
  0x4c   : > { %229 = vst [vmem:[%s581_s12 + $0x20] sm:$0xff] %v221_v14  ;;  %230 = vst [vmem:[%s581_s12 + $0x30] sm:$0xff] %v222_v15 }
  0x4d   : > { %231 = vst [vmem:[%s581_s12 + $0x40] sm:$0xff] %v223_v19  ;;  %232 = vst [vmem:[%s581_s12 + $0x50] sm:$0xff] %v224_v20 }
  0x4e   : > { %233 = vst [vmem:[%s581_s12 + $0x60] sm:$0xff] %v225_v21  ;;  %234 = vst [vmem:[%s581_s12 + $0x70] sm:$0xff] %v226_v23 }
  0x55   : > { %v235_v24 = vld [vmem:[%s576_s3 + $0x8] sm:$0xff]  ;;  %v236_v25 = vld [vmem:[%s576_s3 + $0x18] sm:$0xff] }
  0x56   : > { %v237_v26 = vld [vmem:[%s576_s3 + $0x28] sm:$0xff]  ;;  %v238_v27 = vld [vmem:[%s576_s3 + $0x38] sm:$0xff]  ;;  %v243_v30 = vadd.f32 %v235_v24, %v203_v0  ;;  %v244_v31 = vadd.f32 %v236_v25, %v204_v10 }
  0x57   : > { %v239_v28 = vld [vmem:[%s576_s3 + $0x48] sm:$0xff]  ;;  %v240_v29 = vld [vmem:[%s576_s3 + $0x58] sm:$0xff]  ;;  %v245_v32 = vadd.f32 %v237_v26, %v205_v11  ;;  %v246_v35 = vadd.f32 %v238_v27, %v206_v12 }
  0x58   : > { %v241_v33 = vld [vmem:[%s576_s3 + $0x68] sm:$0xff]  ;;  %v242_v34 = vld [vmem:[%s576_s3 + $0x78] sm:$0xff]  ;;  %v247_v36 = vadd.f32 %v239_v28, %v207_v16  ;;  %v248_v37 = vadd.f32 %v240_v29, %v208_v17 }
  0x59   : > { %v249_v38 = vadd.f32 %v241_v33, %v209_v18  ;;  %v250_v39 = vadd.f32 %v242_v34, %v210_v22  ;;  %251 = vst [vmem:[%s581_s12 + $0x8] sm:$0xff] %v243_v30  ;;  %252 = vst [vmem:[%s581_s12 + $0x18] sm:$0xff] %v244_v31 }
  0x5a   : > { %253 = vst [vmem:[%s581_s12 + $0x28] sm:$0xff] %v245_v32  ;;  %254 = vst [vmem:[%s581_s12 + $0x38] sm:$0xff] %v246_v35 }
  0x5b   : > { %255 = vst [vmem:[%s581_s12 + $0x48] sm:$0xff] %v247_v36  ;;  %256 = vst [vmem:[%s581_s12 + $0x58] sm:$0xff] %v248_v37 }
  0x5c   : > { %257 = vst [vmem:[%s581_s12 + $0x68] sm:$0xff] %v249_v38  ;;  %258 = vst [vmem:[%s581_s12 + $0x78] sm:$0xff] %v250_v39 }
  0x5d PF: > { %p12_p6 = scmp.ge.s32.totalorder %s501_s14, 6   ;;  %s640_s9 = smov %s453_s10 }
  0x5e   : > { %s641_s10 = smov %s457_s11  ;;  %s642_s11 = smov %s511_s17 }
  0x5f   : > { %s643_s12 = smov %s501_s14  ;;  %14 = sbr.rel (!%p12_p6) target bundleno = 3 (0x3), region = 71 }
  0x66   :  { %283 = vsyncpa [#allocation3], 1 }
  0x67   :  { %285 = vsyncpa [#allocation3 + $0x1], 1 }

</bundles_post_ra>
